<compile_context>
chip_gen: v7x
topology: tpu7x:2x2x1
jax: 0.10.0
libtpu: 0.0.40
codegen_flags: <defaults>
</compile_context>

<pallas_src>
import functools

import jax
import jax.numpy as jnp
from jax.experimental import pallas as pl
from jax.experimental.pallas import tpu as pltpu


# ----------------------------------------------------------------------------
# Small helpers
# ----------------------------------------------------------------------------
def _round_up(x, m):
    return ((x + m - 1) // m) * m


_VMEM_LIMIT_BYTES = 48 * 1024 * 1024   # explicit scoped-VMEM budget (v7x-safe)
_TILE_BUDGET_BYTES = 24 * 1024 * 1024  # keep tiles well under the limit


def _choose_tiles(M, N, K):
    """Pick (tm, tn, tk) under an explicit VMEM budget."""
    tm = min(_round_up(M, 8), 128)
    Np = _round_up(N, 128)
    if Np >= 1024:
        tn = 512                      # big FC weights: stream wide slabs
    elif Np % 256 == 0:
        tn = 256                      # v6e/v7x MXU is 2x256-wide
    else:
        tn = 128
    tk = _round_up(K, 128)            # prefer full-K (no K grid axis)

    def vmem_bytes(tk_, tn_):
        # 2x double-buffered bf16 A/B tiles + double-buffered f32 out +
        # possible f32 residual tile + f32 accumulator scratch.
        return (2 * (tm * tk_ + tk_ * tn_) * 2
                + 2 * tm * tn_ * 4
                + 2 * tm * tn_ * 4
                + tm * tn_ * 4)

    while vmem_bytes(tk, tn) > _TILE_BUDGET_BYTES and tk > 512:
        tk = _round_up(tk // 2, 128)
    while vmem_bytes(tk, tn) > _TILE_BUDGET_BYTES and tn > 128:
        tn //= 2
    # Keep >= 2 independent parallel blocks when possible (v7x: 2 TCs/chip).
    if (M + tm - 1) // tm == 1 and Np // tn < 2 and tn > 128:
        tn //= 2
    return tm, tn, tk


# ----------------------------------------------------------------------------
# Pallas kernels
# ----------------------------------------------------------------------------
def _mm_kernel(*refs, relu, has_res, multi_k):
    """o = relu?(A @ B + bias (+ residual)).  bf16 A/B, f32 accumulate."""
    if has_res:
        a_ref, b_ref, bias_ref, res_ref = refs[:4]
        rest = refs[4:]
    else:
        a_ref, b_ref, bias_ref = refs[:3]
        res_ref = None
        rest = refs[3:]

    if multi_k:
        o_ref, acc_ref = rest
        k = pl.program_id(2)

        @pl.when(k == 0)
        def _():
            acc_ref[...] = jnp.zeros_like(acc_ref)

        acc_ref[...] += jnp.dot(a_ref[...], b_ref[...],
                                preferred_element_type=jnp.float32)

        @pl.when(k == pl.num_programs(2) - 1)
        def _():
            r = acc_ref[...] + bias_ref[...]
            if has_res:
                r = r + res_ref[...].astype(jnp.float32)
            if relu:
                r = jnp.maximum(r, 0.0)
            o_ref[...] = r.astype(o_ref.dtype)
    else:
        (o_ref,) = rest
        r = jnp.dot(a_ref[...], b_ref[...],
                    preferred_element_type=jnp.float32) + bias_ref[...]
        if has_res:
            r = r + res_ref[...].astype(jnp.float32)
        if relu:
            r = jnp.maximum(r, 0.0)
        o_ref[...] = r.astype(o_ref.dtype)


def _max9_kernel(*refs):
    """Elementwise max over k*k pooling-window views (last ref is output)."""
    o_ref = refs[-1]
    r = refs[0][...]
    for x_ref in refs[1:-1]:
        r = jnp.maximum(r, x_ref[...])
    o_ref[...] = r


def _mean_reduce_kernel(x_ref, o_ref):
    # x: [N, HW, Cb] -> mean over spatial axis (global average pool).
    o_ref[...] = jnp.mean(x_ref[...], axis=1)


# ----------------------------------------------------------------------------
# Pallas wrappers
# ----------------------------------------------------------------------------
def matmul_bias(a, w, bias, residual=None, relu=False):
    """a:[M,K] @ w:[K,N] + bias[N] (+ residual[M,N]) with optional ReLU."""
    M, K = a.shape
    _, N = w.shape
    tm, tn, tk = _choose_tiles(M, N, K)
    Mp = _round_up(M, tm)
    Kp = _round_up(K, tk)
    Np = _round_up(N, tn)

    a_p = jnp.pad(a.astype(jnp.bfloat16), ((0, Mp - M), (0, Kp - K)))
    w_p = jnp.pad(w.astype(jnp.bfloat16), ((0, Kp - K), (0, Np - N)))
    b_p = jnp.pad(bias.astype(jnp.float32).reshape(1, -1),
                  ((0, 0), (0, Np - N)))

    nk = Kp // tk
    multi_k = nk > 1
    has_res = residual is not None

    if multi_k:
        grid = (Mp // tm, Np // tn, nk)
        a_spec = pl.BlockSpec((tm, tk), lambda i, j, k: (i, k))
        b_spec = pl.BlockSpec((tk, tn), lambda i, j, k: (k, j))
        bias_spec = pl.BlockSpec((1, tn), lambda i, j, k: (0, j))
        out_spec = pl.BlockSpec((tm, tn), lambda i, j, k: (i, j))
        scratch = [pltpu.VMEM((tm, tn), jnp.float32)]
        dims = ("parallel", "parallel", "arbitrary")
    else:
        grid = (Mp // tm, Np // tn)
        a_spec = pl.BlockSpec((tm, tk), lambda i, j: (i, 0))
        b_spec = pl.BlockSpec((tk, tn), lambda i, j: (0, j))
        bias_spec = pl.BlockSpec((1, tn), lambda i, j: (0, j))
        out_spec = pl.BlockSpec((tm, tn), lambda i, j: (i, j))
        scratch = []
        dims = ("parallel", "parallel")

    inputs = [a_p, w_p, b_p]
    in_specs = [a_spec, b_spec, bias_spec]
    if has_res:
        r_p = jnp.pad(residual.astype(jnp.float32),
                      ((0, Mp - M), (0, Np - N)))
        inputs.append(r_p)
        in_specs.append(out_spec)

    out = pl.pallas_call(
        functools.partial(_mm_kernel, relu=relu, has_res=has_res,
                          multi_k=multi_k),
        out_shape=jax.ShapeDtypeStruct((Mp, Np), jnp.float32),
        grid_spec=pltpu.PrefetchScalarGridSpec(
            num_scalar_prefetch=0,
            grid=grid,
            in_specs=in_specs,
            out_specs=out_spec,
            scratch_shapes=scratch,
        ),
        compiler_params=pltpu.CompilerParams(
            dimension_semantics=dims,
            vmem_limit_bytes=_VMEM_LIMIT_BYTES),
    )(*inputs)
    return out[:M, :N]


def maxpool2d(x, k=3, stride=2, pad=1):
    """3x3/2 max pool: k*k strided views passed separately, max in-kernel."""
    N, H, W, C = x.shape
    neg = jnp.finfo(x.dtype).min
    xp = jnp.pad(x, ((0, 0), (pad, pad), (pad, pad), (0, 0)),
                 constant_values=neg)
    Ho = (H + 2 * pad - k) // stride + 1
    Wo = (W + 2 * pad - k) // stride + 1
    M = N * Ho * Wo

    views = [
        xp[:, i:i + stride * Ho:stride, j:j + stride * Wo:stride, :]
        .reshape(M, C)
        for i in range(k) for j in range(k)
    ]
    bm = min(_round_up(M, 8), 512)
    Mp = _round_up(M, bm)
    if Mp != M:
        views = [jnp.pad(v, ((0, Mp - M), (0, 0))) for v in views]

    in_specs = [pl.BlockSpec((bm, C), lambda i: (i, 0)) for _ in range(k * k)]
    out = pl.pallas_call(
        _max9_kernel,
        out_shape=jax.ShapeDtypeStruct((Mp, C), x.dtype),
        grid_spec=pltpu.PrefetchScalarGridSpec(
            num_scalar_prefetch=0,
            grid=(Mp // bm,),
            in_specs=in_specs,
            out_specs=pl.BlockSpec((bm, C), lambda i: (i, 0)),
        ),
        compiler_params=pltpu.CompilerParams(
            dimension_semantics=("parallel",),
            vmem_limit_bytes=_VMEM_LIMIT_BYTES),
    )(*views)
    return out[:M].reshape(N, Ho, Wo, C)


def global_avgpool(x):
    """AdaptiveAvgPool2d((1,1)) -> [N, C], tiled over channel blocks."""
    N, H, W, C = x.shape
    HW = H * W
    x2 = x.reshape(N, HW, C)
    cb = 128 if C % 128 == 0 else C
    grid = (C // cb,)
    return pl.pallas_call(
        _mean_reduce_kernel,
        out_shape=jax.ShapeDtypeStruct((N, C), x.dtype),
        grid_spec=pltpu.PrefetchScalarGridSpec(
            num_scalar_prefetch=0,
            grid=grid,
            in_specs=[pl.BlockSpec((N, HW, cb), lambda j: (0, 0, j))],
            out_specs=pl.BlockSpec((N, cb), lambda j: (0, j)),
        ),
        compiler_params=pltpu.CompilerParams(
            dimension_semantics=("parallel",),
            vmem_limit_bytes=_VMEM_LIMIT_BYTES),
    )(x2)


# ----------------------------------------------------------------------------
# Conv (im2col, built in bf16) + folded BatchNorm
# ----------------------------------------------------------------------------
def _im2col(x, kh, kw, stride, pad):
    N, H, W, C = x.shape
    xp = jnp.pad(x.astype(jnp.bfloat16),
                 ((0, 0), (pad, pad), (pad, pad), (0, 0)))
    Ho = (H + 2 * pad - kh) // stride + 1
    Wo = (W + 2 * pad - kw) // stride + 1
    cols = []
    for i in range(kh):
        for j in range(kw):
            cols.append(xp[:, i:i + stride * Ho:stride,
                           j:j + stride * Wo:stride, :])
    patches = jnp.concatenate(cols, axis=-1)          # [N, Ho, Wo, kh*kw*C]
    # TODO(synk): in-kernel patch assembly (DMA row stripes + VMEM slices)
    # would remove the duplicated patch traffic entirely.
    return patches.reshape(N * Ho * Wo, kh * kw * C), Ho, Wo


def conv_bn(x, p, stride, pad, relu, residual=None):
    """conv2d (inference BN folded into p['w'], p['b']) via im2col + matmul."""
    kh, kw, cin, cout = p['w'].shape
    patches, Ho, Wo = _im2col(x, kh, kw, stride, pad)
    res2d = None if residual is None else residual.reshape(-1, cout)
    out = matmul_bias(patches, p['w'].reshape(kh * kw * cin, cout), p['b'],
                      residual=res2d, relu=relu)
    return out.reshape(x.shape[0], Ho, Wo, cout)


def basic_block(x, blk):
    stride = blk['stride']
    identity = x
    out = conv_bn(x, blk['conv1'], stride=stride, pad=1, relu=True)
    if 'down' in blk:
        identity = conv_bn(x, blk['down'], stride=stride, pad=0, relu=False)
    # Residual add + ReLU fused into conv2's matmul epilogue.
    out = conv_bn(out, blk['conv2'], stride=1, pad=1, relu=True,
                  residual=identity)
    return out


# ----------------------------------------------------------------------------
# Deterministic parameter construction (synthetic, no checkpoint)
# ----------------------------------------------------------------------------
def _init_conv_bn(key, kh, kw, cin, cout):
    k1, k2, k3, k4, k5 = jax.random.split(key, 5)
    fan_in = kh * kw * cin
    w = jax.random.normal(k1, (kh, kw, cin, cout), jnp.float32) * jnp.sqrt(
        2.0 / fan_in)
    gamma = 1.0 + 0.1 * jax.random.normal(k2, (cout,), jnp.float32)
    beta = 0.1 * jax.random.normal(k3, (cout,), jnp.float32)
    mean = 0.1 * jax.random.normal(k4, (cout,), jnp.float32)
    var = 1.0 + 0.1 * jax.random.uniform(k5, (cout,), jnp.float32)
    eps = 1e-5
    s = gamma / jnp.sqrt(var + eps)
    # Fold inference-mode BatchNorm into the conv weight / bias; store bf16
    # weights (MXU-native), keep the bias in f32 for the f32 epilogue.
    return {'w': (w * s).astype(jnp.bfloat16),
            'b': (beta - mean * s).astype(jnp.float32)}


def _init_linear(key, fin, fout):
    k1, k2 = jax.random.split(key)
    w = jax.random.normal(k1, (fin, fout), jnp.float32) * jnp.sqrt(2.0 / fin)
    b = 0.01 * jax.random.normal(k2, (fout,), jnp.float32)
    return {'w': w.astype(jnp.bfloat16), 'b': b.astype(jnp.float32)}


def make_params(key, num_class=120):
    keys = iter(jax.random.split(key, 128))
    params = {'conv1': _init_conv_bn(next(keys), 7, 7, 3, 64)}
    layer_cfg = [(64, 64, 1, 3), (64, 128, 2, 4),
                 (128, 256, 2, 6), (256, 512, 2, 3)]
    layers = []
    for cin, cout, stride, nblocks in layer_cfg:
        blocks = []
        for bi in range(nblocks):
            s = stride if bi == 0 else 1
            ci = cin if bi == 0 else cout
            blk = {
                'conv1': _init_conv_bn(next(keys), 3, 3, ci, cout),
                'conv2': _init_conv_bn(next(keys), 3, 3, cout, cout),
                'stride': s,
            }
            if s != 1 or ci != cout:
                blk['down'] = _init_conv_bn(next(keys), 1, 1, ci, cout)
            blocks.append(blk)
        layers.append(blocks)
    params['layers'] = layers
    params['fc1'] = _init_linear(next(keys), 512, 4096)
    params['fc2'] = _init_linear(next(keys), 4096, 4096)
    params['fc3'] = _init_linear(next(keys), 4096, num_class)
    return params


# ----------------------------------------------------------------------------
# Full forward pass (mirrors ResNet34.forward)
# ----------------------------------------------------------------------------
def resnet34_forward(params, x_nchw):
    x = jnp.transpose(x_nchw, (0, 2, 3, 1)).astype(jnp.float32)  # NCHW -> NHWC
    # features: conv1 + bn1 + relu + maxpool + layer1..4 + avgpool
    x = conv_bn(x, params['conv1'], stride=2, pad=3, relu=True)
    x = maxpool2d(x, k=3, stride=2, pad=1)
    for blocks in params['layers']:
        for blk in blocks:
            x = basic_block(x, blk)
    feat = global_avgpool(x)                       # [N, 512]  (== x.view(N,-1))
    # classifier: Linear+ReLU+Dropout, Linear+ReLU+Dropout, Linear
    h = matmul_bias(feat, params['fc1']['w'], params['fc1']['b'], relu=True)
    # TODO(synk): nn.Dropout(p=0.5) treated as identity (inference mode).
    h = matmul_bias(h, params['fc2']['w'], params['fc2']['b'], relu=True)
    logits = matmul_bias(h, params['fc3']['w'], params['fc3']['b'], relu=False)
    return logits


if __name__ == "__main__":
    key = jax.random.PRNGKey(0)
    pkey, xkey = jax.random.split(key)
    params = make_params(pkey, num_class=120)
    # conv1 expects 3 input channels; 32x32 spatial keeps every stage valid.
    x = jax.random.normal(xkey, (2, 3, 32, 32), jnp.float32)   # NCHW like torch
    out = resnet34_forward(params, x)
    out = jax.block_until_ready(out)
    assert out.shape == (2, 120), out.shape
    assert bool(jnp.all(jnp.isfinite(out)))
    print("KERNEL_OK")
</pallas_src>

<mosaic_0001>
module attributes {stable_mosaic.version = 11 : i64} {
  func.func @_mm_kernel(%arg0: i32, %arg1: i32, %arg2: memref<128x256xbf16, #tpu.memory_space<vmem>>, %arg3: memref<256x128xbf16, #tpu.memory_space<vmem>>, %arg4: memref<1x128xf32, #tpu.memory_space<vmem>>, %arg5: memref<128x128xf32, #tpu.memory_space<vmem>>) attributes {dimension_semantics = [#tpu.dimension_semantics<parallel>, #tpu.dimension_semantics<parallel>], iteration_bounds = array<i64: 4, 1>, scalar_prefetch = 0 : i64, scratch_operands = 0 : i64, tpu.core_type = #tpu.core_type<tc>, window_params = [{transform_indices = @transform_0, window_bounds = array<i64: 128, 256>}, {transform_indices = @transform_1, window_bounds = array<i64: 256, 128>}, {transform_indices = @transform_2, window_bounds = array<i64: 1, 128>}, {transform_indices = @transform_3, window_bounds = array<i64: 128, 128>}]} {
    %c0 = arith.constant 0 : index
    %c0_0 = arith.constant 0 : index
    %0 = vector.load %arg2[%c0, %c0_0] : memref<128x256xbf16, #tpu.memory_space<vmem>>, vector<128x256xbf16>
    %c0_1 = arith.constant 0 : index
    %c0_2 = arith.constant 0 : index
    %1 = vector.load %arg3[%c0_1, %c0_2] : memref<256x128xbf16, #tpu.memory_space<vmem>>, vector<256x128xbf16>
    %cst = arith.constant dense<0.000000e+00> : vector<128x128xf32>
    %2 = tpu.matmul %0, %1, %cst {dimension_numbers = #tpu.dot_dimension_numbers<[1], [0], [0], [1], [0, 0, 1, 1], [], []>} : vector<128x256xbf16>, vector<256x128xbf16>, vector<128x128xf32> -> vector<128x128xf32>
    %c0_3 = arith.constant 0 : index
    %c0_4 = arith.constant 0 : index
    %3 = vector.load %arg4[%c0_3, %c0_4] : memref<1x128xf32, #tpu.memory_space<vmem>>, vector<1x128xf32>
    %4 = vector.broadcast %3 : vector<1x128xf32> to vector<128x128xf32>
    %5 = arith.addf %2, %4 : vector<128x128xf32>
    %cst_5 = arith.constant 0.000000e+00 : f32
    %6 = vector.broadcast %cst_5 : f32 to vector<128x128xf32>
    %7 = arith.maximumf %5, %6 : vector<128x128xf32>
    %c0_6 = arith.constant 0 : index
    %c0_7 = arith.constant 0 : index
    %8 = vector.load %arg5[%c0_6, %c0_7] : memref<128x128xf32, #tpu.memory_space<vmem>>, vector<128x128xf32>
    tpu.vector_store %arg5[%c0_6, %c0_7], %7 {strides = array<i32>} : memref<128x128xf32, #tpu.memory_space<vmem>>, vector<128x128xf32>,
    return
  }
  func.func @transform_0(%arg0: i32, %arg1: i32) -> (i32, i32) {
    %c0_i32 = arith.constant 0 : i32
    %c0_i32_0 = arith.constant 0 : i32
    return %arg0, %c0_i32 : i32, i32
  }
  func.func @transform_1(%arg0: i32, %arg1: i32) -> (i32, i32) {
    %c0_i32 = arith.constant 0 : i32
    %c0_i32_0 = arith.constant 0 : i32
    return %c0_i32, %arg1 : i32, i32
  }
  func.func @transform_2(%arg0: i32, %arg1: i32) -> (i32, i32) {
    %c0_i32 = arith.constant 0 : i32
    %c0_i32_0 = arith.constant 0 : i32
    return %c0_i32, %arg1 : i32, i32
  }
  func.func @transform_3(%arg0: i32, %arg1: i32) -> (i32, i32) {
    %c0_i32 = arith.constant 0 : i32
    return %arg0, %arg1 : i32, i32
  }
}

</mosaic_0001>

<bundles_post_ra>
// kernel: tpu_custom_call.1
= control target key start
LH: loop header
LB: loop body
LE: loop exit
PB: predicated region body
PF: predicated region fallthrough
CT: control target
= control target key end

     0   :  { %8 = vsyncpa [#allocation3], 0  ;;  %s1433_s0 = inlined_call_operand.hbm [shape: bf16[512,256], index: 0, kind: input, shape index: {}]   ;;  %s1434_s1 = inlined_call_operand.hbm [shape: bf16[256,128], index: 1, kind: input, shape index: {}]   ;;  %s1435_s2 = inlined_call_operand.vmem [shape: f32[1,128], index: 2, kind: input, shape index: {}]   ;;  %s1436_s3 = inlined_call_operand.hbm [shape: f32[512,128], index: 3, kind: output, shape index: {}]  }
   0x1   :  { %10 = vsyncpa [#allocation3 + $0x1], 0 }
   0x2   :  { %11 = vsyncpa [#allocation6], 0 }
   0x3   :  { %12 = vsyncpa [#allocation4], 0 }
   0x4   :  { %14 = vsyncpa [#allocation4 + $0x1], 0  ;;  %s1154_s12 = smov 0   ;;  %s1156_s13 = smov 0  }
   0x5   :  { %s1158_s14 = smov 0   ;;  %s1160_s15 = smov 0  }
   0x6   :  { %s1162_s16 = smov 0   ;;  %s1164_s17 = smov 0  }
   0x7 LB: > { %s725_s18 = sadd.s32 4294967295, %s1123_s17   ;;  %s726_s19 = sadd.s32 4294967294, %s1123_s17   ;;  %s1123_s17 = sphi %s1164_s17, %s20_s17   ;;  %s1119_s16 = sphi %s1162_s16, %s1459_s16   ;;  %s1115_s15 = sphi %s1160_s15, %s1458_s15   ;;  %s1111_s14 = sphi %s1158_s14, %s1457_s14   ;;  %s1107_s13 = sphi %s1156_s13, %s1456_s13   ;;  %s1103_s12 = sphi %s1154_s12, %s1455_s12  }
   0x8   : > { %p52_p0 = scmp.ne.s32.totalorder %s1107_s13, %s1103_s12  ;;  %p1188_p1 = scmp.eq.s32.totalorder %s725_s18, 0 }
   0x9   : > { %p1192_p2 = scmp.eq.s32.totalorder %s725_s18, 3  ;;  %p136_p3 = scmp.eq.s32.totalorder %s726_s19, 3 }
   0xa   : > { %s1441_s20 = scalar_select %p1188_p1, 1, 0 }
   0xb   : > { %s1442_s21 = scalar_select %p1192_p2, 1, 0 }
   0xc   : > { %p1198_p4 = por %p1188_p1, %p52_p0  ;;  %p727_p5 = scmp.ge.s32.totalorder %s1123_s17, 1 }
   0xd   : > { %p1203_p6 = por %p136_p3, %p52_p0  ;;  %p143_p7 = scmp.lt.s32.totalorder %s1123_s17, 5 }
   0xe   : > { %s1443_s22 = scalar_select %p1198_p4, 1, 0 }
   0xf   : > { %s1444_s23 = scalar_select %p1203_p6, 1, 0 }
  0x10   : > { %p1208_p8 = pnand %p727_p5, %p143_p7  ;;  %s1125_s25 = smov [#allocation5]  }
  0x11   : > { %s157_s26 = sshll.u32 %s1125_s25, 4  ;;  %s32_s28 = sadd.s32 1, %s1119_s16  ;;  %s158_s26 = int_to_ptr.vmem [resolvable:$true] %s157_s26 }
  0x12   : > { %s1445_s24 = scalar_select %p1208_p8, 1, 0 }
  0x13   : > { %p868_p9 = pneg %p1208_p8  ;;  %s979_s4 = scalar_lea.hbm %s1434_s1, 2048 }
  0x14   : > { %p980_p11 = scmp.ne.s32.totalorder %s1434_s1, %s979_s4  ;;  %p986_p3 = scmp.lt.u32.totalorder %s979_s4, %s1434_s1 }
  0x15   : > { %p1216_p10 = pnand %p868_p9, %p1188_p1 }
  0x17   : > { %p981_p12 = pneg %p1216_p10 }
  0x19   : > { %p982_p13 = pnand %p981_p12, %p980_p11 }
  0x1b   : > { %p983_p0 = pneg %p982_p13 }
  0x1d   : > { %p988_p5 = pnand %p986_p3, %p983_p0 }
  0x1f   : > { %991 = shalt.err (!%p988_p5)
}
  0x20   : > { %s992_s9 = scalar_lea.vmem %s158_s26, 2048  ;;  %p1000_p1 = scmp.lt.s32.totalorder %s158_s26, %s158_s26 }
  0x21   : > { %p993_p7 = scmp.ne.s32.totalorder %s158_s26, %s992_s9  ;;  %p1001_p4 = scmp.lt.s32.totalorder %s992_s9, %s992_s9 }
  0x23   : > { %p995_p9 = pnand %p993_p7, %p981_p12  ;;  %p1002_p8 = por %p1001_p4, %p1000_p1 }
  0x25   : > { %p996_p6 = pneg %p995_p9 }
  0x27   : > { %p1003_p2 = pnand %p1002_p8, %p996_p6 }
  0x29   : > { %1006 = shalt.err (!%p1003_p2)
}
  0x2a   : > { %s1126_s10 = smov 64   ;;  %s1127_s11 = smov 4  }
  0x2b   : > { %871 = dma.hbm_to_vmem [thread:$0]  (!%p1216_p10), %s1434_s1, 2048, %s158_s26, [#allocation6], %s1126_s10, %s1126_s10, %s1127_s11  }
  0x2c   : > { %p34_p1 = scmp.ge.s32.totalorder %s32_s28, 4  ;;  %s39_s25 = sadd.s32 1, %s1111_s14 }
  0x2d   : > { %p46_p2 = scmp.ne.s32.totalorder %s1111_s14, %s1107_s13  ;;  %p47_p4 = scmp.eq.s32.totalorder %s1123_s17, 0 }
  0x2e   : > { %s1461_s28 = smov (%p34_p1, %s32_s28), 0  ;;  %p1448_p8 = scmp.ne.s32.totalorder %s1442_s21, 0 }
  0x2f   : > { %p1243_p6 = por %p47_p4, %p46_p2  ;;  %s36_s27 = ssub.s32 %s1119_s16, %s1461_s28 }
  0x30   : > { %p1249_p11 = por %p1448_p8, %p46_p2  ;;  %p881_p12 = scmp.lt.s32.totalorder %s1123_s17, 4 }
  0x31   : > { %p37_p10 = scmp.eq.s32.totalorder %s36_s27, 0  ;;  %s177_s26 = sand.u32 1, %s1111_s14  }
  0x32   : > { %s731_s4 = sshll.u32 %s177_s26, 7  ;;  %s778_s6 = sshll.u32 %s1119_s16, 11 }
  0x33   : > { %s1258_s5 = scalar_select %p37_p10, %s1111_s14, %s39_s25  }
  0x34   : > { %s1264_s9 = scalar_lea.hbm %s1433_s0, %s778_s6  ;;  %s181_s21 = scalar_lea.vmem [#allocation2], %s731_s4 }
  0x35   : > { %s189_s10 = sshll.u32 %s181_s21, 4  ;;  %p1270_p13 = pnand %p881_p12, %p1243_p6  ;;  %s1266_s10 = int_to_ptr.vmem [resolvable:$true] %s189_s10 }
  0x36   : > { %s1274_s18 = scalar_lea.sflag [#allocation3], %s177_s26  ;;  %s1007_s19 = scalar_lea.hbm %s1264_s9, 2048 }
  0x37   : > { %p1008_p0 = scmp.ne.s32.totalorder %s1264_s9, %s1007_s19  ;;  %p1009_p3 = pneg %p1270_p13 }
  0x38   : > { %s1012_s29 = scalar_lea.hbm %s1433_s0, 8192  ;;  %p1013_p9 = scmp.lt.u32.totalorder %s1264_s9, %s1433_s0 }
  0x39   : > { %p1010_p5 = pnand %p1009_p3, %p1008_p0  ;;  %p1014_p1 = scmp.lt.u32.totalorder %s1012_s29, %s1007_s19 }
  0x3a   : > { %p1016_p4 = scmp.lt.u32.totalorder %s1007_s19, %s1264_s9 }
  0x3b   : > { %p1011_p7 = pneg %p1010_p5  ;;  %p1015_p2 = por %p1014_p1, %p1013_p9 }
  0x3d   : > { %p1017_p6 = por %p1016_p4, %p1015_p2 }
  0x3f   : > { %p1018_p8 = pnand %p1017_p6, %p1011_p7 }
  0x41   : > { %1021 = shalt.err (!%p1018_p8)
}
  0x42   : > { %s1022_s26 = scalar_lea.vmem %s1266_s10, 2048  ;;  %s1128_s7 = smov [#allocation2]  }
  0x43   : > { %p1023_p12 = scmp.ne.s32.totalorder %s1266_s10, %s1022_s26  ;;  %s1027_s8 = sshll.u32 %s1128_s7, 4  ;;  %s1028_s8 = int_to_ptr.vmem [resolvable:$false] %s1027_s8 }
  0x44   : > { %s1029_s21 = scalar_lea.vmem %s1028_s8, 4096  ;;  %p1030_p5 = scmp.lt.s32.totalorder %s1266_s10, %s1028_s8 }
  0x45   : > { %p1025_p10 = pnand %p1023_p12, %p1009_p3  ;;  %p1031_p9 = scmp.lt.s32.totalorder %s1029_s21, %s1022_s26 }
  0x47   : > { %p1026_p0 = pneg %p1025_p10  ;;  %p1032_p1 = por %p1031_p9, %p1030_p5 }
  0x49   : > { %p1033_p2 = pnand %p1032_p1, %p1026_p0 }
  0x4b   : > { %1036 = shalt.err (!%p1033_p2)
}
  0x4c   : > { %s1129_s19 = smov 128   ;;  %s1130_s25 = smov 8  }
  0x4d   : > { %875 = dma.hbm_to_vmem [thread:$0]  (!%p1270_p13), %s1264_s9, 2048, %s1266_s10, %s1274_s18, %s1129_s19, %s1129_s19, %s1130_s25  }
  0x4e   : > { %p1451_p3 = scmp.ne.s32.totalorder %s1445_s24, 0 }
  0x4f   : > { %s1305_s27 = sand.u32 (!%p1451_p3), 1, %s1107_s13   ;;  %p1452_p7 = scmp.ne.s32.totalorder (!%p1451_p3), %s1443_s22, 0 }
  0x50   : > { %201 = sbr.rel (%p1451_p3) target bundleno = 384 (0x180), region = 32  ;;  %s736_s29 = sshll.u32 (!%p1451_p3), %s1305_s27, 7 }
  0x51   : > { %s204_s4 = scalar_lea.sflag (!%p1451_p3), [#allocation3], %s1305_s27  ;;  %s1311_s6 = scalar_lea.vmem (!%p1451_p3), [#allocation2], %s736_s29 }
  0x57   : > { %1090 = dma.done.wait (%p1452_p7), %s204_s4, 2048  }
  0x58   : > { %1092 = vsyncadd (%p1452_p7), %s204_s4, 4294965248  ;;  %p1453_p13 = scmp.ne.s32.totalorder %s1441_s20, 0 }
  0x5a   : > { %1094 = dma.done.wait (%p1453_p13), [#allocation6], 2048  }
  0x5b   : > { %1096 = vsyncadd (%p1453_p13), [#allocation6], 4294965248  ;;  %v939_v0 = vld [vmem:[#allocation5 + $0x40] sm:$0xff]   ;;  %v941_v2 = vld [vmem:[#allocation5 + $0x48] sm:$0xff]   ;;  %s1348_s24 = scalar_lea.vmem [#allocation7], %s736_s29  ;;  %s779_s9 = sshll.u32 %s1115_s15, 11 }
  0x5c   : > { %v940_v1 = vld [vmem:[#allocation5] sm:$0xff]   ;;  %780 = vmatprep.subr.bf16.mxu0 %v939_v0  ;;  %844 = vmatprep.subr.bf16.mxu1 %v939_v0  ;;  %v942_v3 = vld [vmem:[#allocation5 + $0x8] sm:$0xff]   ;;  %v943_v4 = vld [vmem:[#allocation5 + $0x50] sm:$0xff]   ;;  %s618_s10 = sshll.u32 %s1348_s24, 4  ;;  %s1379_s26 = scalar_lea.hbm %s1436_s3, %s779_s9  ;;  %s1381_s10 = int_to_ptr.vmem [resolvable:$true] %s618_s10 }
  0x5d   : > { %781 = vmatpush3.bf16.msra.mxu0 %v940_v1  ;;  %852 = vmatpush3.bf16.msra.mxu1 %v940_v1  ;;  %v944_v5 = vld [vmem:[#allocation5 + $0x10] sm:$0xff]   ;;  %v945_v6 = vld [vmem:[#allocation5 + $0x58] sm:$0xff]   ;;  %v947_v8 = vld [vmem:[#allocation5 + $0x60] sm:$0xff]   ;;  %s604_s15 = scalar_lea.sflag [#allocation4], %s1305_s27  ;;  %s1037_s7 = scalar_lea.vmem %s1381_s10, 2048 }
  0x5e   : > { %782 = vmatprep.subr.bf16.mxu0 %v941_v2  ;;  %845 = vmatprep.subr.bf16.mxu1 %v941_v2  ;;  %v946_v7 = vld [vmem:[#allocation5 + $0x18] sm:$0xff]   ;;  %v948_v9 = vld [vmem:[#allocation5 + $0x20] sm:$0xff]   ;;  %v949_v10 = vld [vmem:[#allocation5 + $0x68] sm:$0xff]   ;;  %p1038_p4 = scmp.ne.s32.totalorder %s1381_s10, %s1037_s7  ;;  %s1131_s8 = smov [#allocation7]  }
  0x5f   : > { %v957_v11 = vld [vmem:[%s1311_s6 + $0x4] ss:$8 sps:$4 sm:$0xff]   ;;  %v951_v14 = vld [vmem:[#allocation5 + $0x70] sm:$0xff]   ;;  %v953_v16 = vld [vmem:[#allocation5 + $0x78] sm:$0xff]   ;;  %s1041_s21 = sshll.u32 %s1131_s8, 4  ;;  %s1042_s21 = int_to_ptr.vmem [resolvable:$false] %s1041_s21 }
  0x60   : > { %v960_v12 = vld [vmem:[%s1311_s6 + $0x44] ss:$8 sps:$4 sm:$0xff]   ;;  %506 = vmatprep.mubr.bf16.mxu0 %v957_v11  ;;  %v952_v15 = vld [vmem:[#allocation5 + $0x30] sm:$0xff]   ;;  %v954_v17 = vld [vmem:[#allocation5 + $0x38] sm:$0xff]   ;;  %p1039_p6 = pnand %p1038_p4, %p1249_p11  ;;  %s1043_s19 = scalar_lea.vmem %s1042_s21, 4096 }
  0x61   : > { %783 = vmatpush3.bf16.msra.mxu0 %v942_v3  ;;  %853 = vmatpush3.bf16.msra.mxu1 %v942_v3  ;;  %v950_v13 = vld [vmem:[#allocation5 + $0x28] sm:$0xff]   ;;  %v961_v20 = vld [vmem:[%s1311_s6 + $0x14] ss:$8 sps:$4 sm:$0xff]   ;;  %v965_v22 = vld [vmem:[%s1311_s6 + $0x10] ss:$8 sps:$4 sm:$0xff]   ;;  %p1044_p12 = scmp.lt.s32.totalorder %s1381_s10, %s1042_s21  ;;  %p1045_p10 = scmp.lt.s32.totalorder %s1043_s19, %s1037_s7 }
  0x62   : > { %784 = vmatprep.subr.bf16.mxu0 %v943_v4  ;;  %846 = vmatprep.subr.bf16.mxu1 %v943_v4  ;;  %v955_v18 = vld [vmem:[%s1311_s6] ss:$8 sps:$4 sm:$0xff]   ;;  %v963_v21 = vld [vmem:[%s1311_s6 + $0x54] ss:$8 sps:$4 sm:$0xff]   ;;  %v966_v23 = vld [vmem:[%s1311_s6 + $0x50] ss:$8 sps:$4 sm:$0xff]   ;;  %p1040_p8 = pneg %p1039_p6 }
  0x63   : > { %538 = vmatprep.mubr.bf16.mxu1 %v960_v12  ;;  %v958_v19 = vld [vmem:[%s1311_s6 + $0x40] ss:$8 sps:$4 sm:$0xff]   ;;  %v967_v24 = vld [vmem:[%s1311_s6 + $0x24] ss:$8 sps:$4 sm:$0xff]   ;;  %v973_v28 = vld [vmem:[%s1311_s6 + $0x34] ss:$8 sps:$4 sm:$0xff]   ;;  %p1046_p0 = por %p1045_p10, %p1044_p12 }
  0x64   : > { %v969_v25 = vld [vmem:[%s1311_s6 + $0x64] ss:$8 sps:$4 sm:$0xff]   ;;  %v971_v26 = vld [vmem:[%s1311_s6 + $0x20] ss:$8 sps:$4 sm:$0xff]   ;;  %v975_v29 = vld [vmem:[%s1311_s6 + $0x74] ss:$8 sps:$4 sm:$0xff]  }
  0x65   : > { %785 = vmatpush3.bf16.msra.mxu0 %v944_v5  ;;  %854 = vmatpush3.bf16.msra.mxu1 %v944_v5  ;;  %v972_v27 = vld [vmem:[%s1311_s6 + $0x60] ss:$8 sps:$4 sm:$0xff]   ;;  %v977_v30 = vld [vmem:[%s1311_s6 + $0x30] ss:$8 sps:$4 sm:$0xff]   ;;  %p1047_p5 = pnand %p1046_p0, %p1040_p8 }
  0x66   : > { %786 = vmatprep.subr.bf16.mxu0 %v945_v6  ;;  %847 = vmatprep.subr.bf16.mxu1 %v945_v6  ;;  %v978_v31 = vld [vmem:[%s1311_s6 + $0x70] ss:$8 sps:$4 sm:$0xff]   ;;  %v1340_v34 = vld [vmem:[%s1435_s2] ss:$0 sm:$0xff] }
  0x69   : > { %787 = vmatpush3.bf16.msra.mxu0 %v946_v7  ;;  %855 = vmatpush3.bf16.msra.mxu1 %v946_v7 }
  0x6a   : > { %788 = vmatprep.subr.bf16.mxu0 %v947_v8  ;;  %848 = vmatprep.subr.bf16.mxu1 %v947_v8 }
  0x6d   : > { %789 = vmatpush3.bf16.msra.mxu0 %v948_v9  ;;  %856 = vmatpush3.bf16.msra.mxu1 %v948_v9 }
  0x6e   : > { %790 = vmatprep.subr.bf16.mxu0 %v949_v10  ;;  %849 = vmatprep.subr.bf16.mxu1 %v949_v10 }
  0x71   : > { %791 = vmatpush3.bf16.msra.mxu0 %v950_v13  ;;  %857 = vmatpush3.bf16.msra.mxu1 %v950_v13 }
  0x72   : > { %792 = vmatprep.subr.bf16.mxu0 %v951_v14  ;;  %850 = vmatprep.subr.bf16.mxu1 %v951_v14 }
  0x75   : > { %793 = vmatpush3.bf16.msra.mxu0 %v952_v15  ;;  %858 = vmatpush3.bf16.msra.mxu1 %v952_v15 }
  0x76   : > { %794 = vmatprep.subr.bf16.mxu0 %v953_v16  ;;  %851 = vmatprep.subr.bf16.mxu1 %v953_v16 }
  0x79   : > { %795 = vmatpush3.bf16.msra.mxu0 %v954_v17  ;;  %859 = vmatpush3.bf16.msra.mxu1 %v954_v17 }
  0x7c   : > { %507 = vmatmul.mubr.bf16.vlgmr.msra.gmra.mrb[0].mxu0 %v955_v18  ;;  %539 = vmatmul.mubr.bf16.vlgmr.msra.gmra.mrb[0].mxu1 %v958_v19 }
  0x7d   : > { %514 = vmatprep.mubr.bf16.mxu0 %v961_v20  ;;  %546 = vmatprep.mubr.bf16.mxu1 %v963_v21 }
  0x84   : > { %515 = vmatmul.mubr.bf16.gmra.mrb[4].mxu0 %v965_v22  ;;  %547 = vmatmul.mubr.bf16.gmra.mrb[4].mxu1 %v966_v23 }
  0x85   : > { %522 = vmatprep.mubr.bf16.mxu0 %v967_v24  ;;  %554 = vmatprep.mubr.bf16.mxu1 %v969_v25 }
  0x8c   : > { %523 = vmatmul.mubr.bf16.gmra.mrb[8].mxu0 %v971_v26  ;;  %555 = vmatmul.mubr.bf16.gmra.mrb[8].mxu1 %v972_v27 }
  0x8d   : > { %530 = vmatprep.mubr.bf16.mxu0 %v973_v28  ;;  %562 = vmatprep.mubr.bf16.mxu1 %v975_v29 }
  0x94   : > { %531 = vmatmul.mubr.bf16.gmra.mrb[12].mxu0 %v977_v30  ;;  %563 = vmatmul.mubr.bf16.gmra.mrb[12].mxu1 %v978_v31 }
 0x14f   : > { %v796_v32 = vpop.f32.mrb[0].mxu0  ;;  %v820_v33 = vpop.f32.mrb[0].mxu1 }
 0x150   : > { %v797_v35 = vpop.f32.mrb[1].mxu0  ;;  %v821_v36 = vpop.f32.mrb[1].mxu1 }
 0x151   : > { %v798_v37 = vadd.f32 %v797_v35, %v796_v32  ;;  %v822_v38 = vadd.f32 %v821_v36, %v820_v33  ;;  %v799_v39 = vpop.f32.mrb[2].mxu0  ;;  %v823_v40 = vpop.f32.mrb[2].mxu1 }
 0x152   : > { %v800_v41 = vpop.f32.mrb[3].mxu0  ;;  %v824_v42 = vpop.f32.mrb[3].mxu1 }
 0x153   : > { %v509_v43 = vadd.f32 %v798_v37, %v1340_v34  ;;  %v541_v44 = vadd.f32 %v822_v38, %v1340_v34  ;;  %v801_v45 = vadd.f32 %v800_v41, %v799_v39  ;;  %v825_v46 = vadd.f32 %v824_v42, %v823_v40 }
 0x155   : > { %v571_v47 = vmax.f32 %v509_v43, 0.0  ;;  %v579_v48 = vmax.f32 %v541_v44, 0.0  ;;  %v512_v49 = vadd.f32 %v801_v45, %v1340_v34  ;;  %v544_v50 = vadd.f32 %v825_v46, %v1340_v34 }
 0x157   : > { %587 = vst [vmem:[%s1348_s24] sm:$0xff] %v571_v47  ;;  %595 = vst [vmem:[%s1348_s24 + $0x40] sm:$0xff] %v579_v48  ;;  %v572_v51 = vmax.f32 %v512_v49, 0.0  ;;  %v580_v52 = vmax.f32 %v544_v50, 0.0  ;;  %v802_v53 = vpop.f32.mrb[4].mxu0  ;;  %v826_v54 = vpop.f32.mrb[4].mxu1 }
 0x158   : > { %v803_v55 = vpop.f32.mrb[5].mxu0  ;;  %v827_v56 = vpop.f32.mrb[5].mxu1 }
 0x159   : > { %588 = vst [vmem:[%s1348_s24 + $0x8] sm:$0xff] %v572_v51  ;;  %596 = vst [vmem:[%s1348_s24 + $0x48] sm:$0xff] %v580_v52  ;;  %v804_v57 = vadd.f32 %v803_v55, %v802_v53  ;;  %v828_v58 = vadd.f32 %v827_v56, %v826_v54  ;;  %v805_v59 = vpop.f32.mrb[6].mxu0  ;;  %v829_v60 = vpop.f32.mrb[6].mxu1 }
 0x15a   : > { %v806_v61 = vpop.f32.mrb[7].mxu0  ;;  %v830_v62 = vpop.f32.mrb[7].mxu1 }
 0x15b   : > { %v517_v63 = vadd.f32 %v804_v57, %v1340_v34  ;;  %v549_v0 = vadd.f32 %v828_v58, %v1340_v34  ;;  %v807_v1 = vadd.f32 %v806_v61, %v805_v59  ;;  %v831_v2 = vadd.f32 %v830_v62, %v829_v60 }
 0x15d   : > { %v573_v3 = vmax.f32 %v517_v63, 0.0  ;;  %v581_v4 = vmax.f32 %v549_v0, 0.0  ;;  %v520_v5 = vadd.f32 %v807_v1, %v1340_v34  ;;  %v552_v6 = vadd.f32 %v831_v2, %v1340_v34 }
 0x15f   : > { %589 = vst [vmem:[%s1348_s24 + $0x10] sm:$0xff] %v573_v3  ;;  %597 = vst [vmem:[%s1348_s24 + $0x50] sm:$0xff] %v581_v4  ;;  %v574_v7 = vmax.f32 %v520_v5, 0.0  ;;  %v582_v8 = vmax.f32 %v552_v6, 0.0  ;;  %v808_v9 = vpop.f32.mrb[8].mxu0  ;;  %v832_v10 = vpop.f32.mrb[8].mxu1 }
 0x160   : > { %v809_v11 = vpop.f32.mrb[9].mxu0  ;;  %v833_v12 = vpop.f32.mrb[9].mxu1 }
 0x161   : > { %590 = vst [vmem:[%s1348_s24 + $0x18] sm:$0xff] %v574_v7  ;;  %598 = vst [vmem:[%s1348_s24 + $0x58] sm:$0xff] %v582_v8  ;;  %v810_v13 = vadd.f32 %v809_v11, %v808_v9  ;;  %v834_v14 = vadd.f32 %v833_v12, %v832_v10  ;;  %v811_v15 = vpop.f32.mrb[10].mxu0  ;;  %v835_v16 = vpop.f32.mrb[10].mxu1 }
 0x162   : > { %v812_v17 = vpop.f32.mrb[11].mxu0  ;;  %v836_v18 = vpop.f32.mrb[11].mxu1 }
 0x163   : > { %v525_v19 = vadd.f32 %v810_v13, %v1340_v34  ;;  %v557_v20 = vadd.f32 %v834_v14, %v1340_v34  ;;  %v813_v21 = vadd.f32 %v812_v17, %v811_v15  ;;  %v837_v22 = vadd.f32 %v836_v18, %v835_v16 }
 0x165   : > { %v575_v23 = vmax.f32 %v525_v19, 0.0  ;;  %v583_v24 = vmax.f32 %v557_v20, 0.0  ;;  %v528_v25 = vadd.f32 %v813_v21, %v1340_v34  ;;  %v560_v26 = vadd.f32 %v837_v22, %v1340_v34 }
 0x167   : > { %591 = vst [vmem:[%s1348_s24 + $0x20] sm:$0xff] %v575_v23  ;;  %599 = vst [vmem:[%s1348_s24 + $0x60] sm:$0xff] %v583_v24  ;;  %v576_v27 = vmax.f32 %v528_v25, 0.0  ;;  %v584_v28 = vmax.f32 %v560_v26, 0.0  ;;  %v814_v29 = vpop.f32.mrb[12].mxu0  ;;  %v838_v30 = vpop.f32.mrb[12].mxu1 }
 0x168   : > { %v815_v31 = vpop.f32.mrb[13].mxu0  ;;  %v839_v32 = vpop.f32.mrb[13].mxu1 }
 0x169   : > { %592 = vst [vmem:[%s1348_s24 + $0x28] sm:$0xff] %v576_v27  ;;  %600 = vst [vmem:[%s1348_s24 + $0x68] sm:$0xff] %v584_v28  ;;  %v816_v33 = vadd.f32 %v815_v31, %v814_v29  ;;  %v840_v35 = vadd.f32 %v839_v32, %v838_v30  ;;  %v817_v36 = vpop.f32.mrb[14].mxu0  ;;  %v841_v37 = vpop.f32.mrb[14].mxu1 }
 0x16a   : > { %v818_v38 = vpop.f32.mrb[15].mxu0  ;;  %v842_v39 = vpop.f32.mrb[15].mxu1 }
 0x16b   : > { %v533_v40 = vadd.f32 %v816_v33, %v1340_v34  ;;  %v565_v41 = vadd.f32 %v840_v35, %v1340_v34  ;;  %v819_v42 = vadd.f32 %v818_v38, %v817_v36  ;;  %v843_v43 = vadd.f32 %v842_v39, %v841_v37 }
 0x16d   : > { %v577_v44 = vmax.f32 %v533_v40, 0.0  ;;  %v585_v45 = vmax.f32 %v565_v41, 0.0  ;;  %v536_v46 = vadd.f32 %v819_v42, %v1340_v34  ;;  %v568_v47 = vadd.f32 %v843_v43, %v1340_v34 }
 0x16f   : > { %593 = vst [vmem:[%s1348_s24 + $0x30] sm:$0xff] %v577_v44  ;;  %601 = vst [vmem:[%s1348_s24 + $0x70] sm:$0xff] %v585_v45  ;;  %v578_v48 = vmax.f32 %v536_v46, 0.0  ;;  %v586_v49 = vmax.f32 %v568_v47, 0.0 }
 0x171   : > { %594 = vst [vmem:[%s1348_s24 + $0x38] sm:$0xff] %v578_v48  ;;  %602 = vst [vmem:[%s1348_s24 + $0x78] sm:$0xff] %v586_v49 }
 0x172   : > { %1050 = shalt.err (!%p1047_p5)
}
 0x173   : > { %s1051_s25 = scalar_lea.hbm %s1379_s26, 2048  ;;  %s1055_s6 = scalar_lea.hbm %s1436_s3, 8192 }
 0x174   : > { %p1052_p9 = scmp.ne.s32.totalorder %s1379_s26, %s1051_s25  ;;  %p1056_p3 = scmp.lt.u32.totalorder %s1379_s26, %s1436_s3 }
 0x175   : > { %p1057_p7 = scmp.lt.u32.totalorder %s1055_s6, %s1051_s25  ;;  %p1059_p4 = scmp.lt.u32.totalorder %s1051_s25, %s1379_s26 }
 0x176   : > { %p1053_p1 = pnand %p1052_p9, %p1249_p11 }
 0x177   : > { %p1058_p13 = por %p1057_p7, %p1056_p3 }
 0x178   : > { %p1054_p2 = pneg %p1053_p1 }
 0x179   : > { %p1060_p6 = por %p1059_p4, %p1058_p13 }
 0x17b   : > { %p1061_p8 = pnand %p1060_p6, %p1054_p2 }
 0x17d   : > { %1064 = shalt.err (!%p1061_p8)
}
 0x17e   : > { %s1132_s24 = smov 128   ;;  %s1133_s9 = smov 8  }
 0x17f   : > { %866 = dma.vmem_to_hbm [thread:$0]  (%p1249_p11), %s1381_s10, 2048, %s1379_s26, %s604_s15, %s1132_s24, %s1132_s24, %s1133_s9  }
 0x180 PF: > { %p883_p12 = scmp.ge.s32.totalorder %s1123_s17, 2  ;;  %s633_s11 = sand.u32 1, %s1103_s12  }
 0x181   : > { %p1454_p10 = scmp.ne.s32.totalorder %s1444_s23, 0  ;;  %s634_s18 = scalar_lea.sflag [#allocation4], %s633_s11 }
 0x183   : > { %p877_p0 = pnand %p883_p12, %p1454_p10 }
 0x185   : > { %1098 = dma.done.wait (!%p877_p0), %s634_s18, 2048  }
 0x186   : > { %1100 = vsyncadd (!%p877_p0), %s634_s18, 4294965248  ;;  %s20_s17 = sadd.s32 1, %s1123_s17   ;;  %s1455_s12 = smov %s1107_s13 }
 0x187   : > { %p17_p5 = scmp.ge.s32.totalorder %s20_s17, 6   ;;  %s1456_s13 = smov %s1111_s14 }
 0x188   : > { %s1457_s14 = smov %s1258_s5  ;;  %s1458_s15 = smov %s1119_s16 }
 0x189   : > { %s1459_s16 = smov %s1461_s28  ;;  %19 = sbr.rel (!%p17_p5) target bundleno = 7 (0x7), region = 85 }
 0x190   :  { %639 = vsyncpa [#allocation3], 1 }
 0x191   :  { %641 = vsyncpa [#allocation3 + $0x1], 1 }
 0x192   :  { %642 = vsyncpa [#allocation6], 1 }
 0x193   :  { %643 = vsyncpa [#allocation4], 1 }
 0x194   :  { %645 = vsyncpa [#allocation4 + $0x1], 1 }

</bundles_post_ra>
